<compile_context>
chip_gen: v7x
topology: tpu7x:2x2x1
jax: 0.10.0
libtpu: 0.0.40
codegen_flags: <defaults>
</compile_context>

<pallas_src>
import jax
import jax.numpy as jnp
from jax import lax
from jax.experimental import pallas as pl
from jax.experimental.pallas import tpu as pltpu

BN_EPS = 1e-5
NEG_SLOPE = 0.1


def _leaky_relu(h):
    return jnp.where(h > 0, h, NEG_SLOPE * h)


def mlp_kernel(x_ref,
               w1_ref, b1_ref,
               w2_ref, b2_ref,
               w3_ref, b3_ref,
               w4_ref, b4_ref,
               o_ref):
    # x tile arrives row-major [TB, F] — one contiguous DMA burst per step.
    x = x_ref[...]  # [TB, F] f32

    # Layer 1: BN-folded Linear(F,128) + LeakyReLU (Dropout(0.3) == identity at eval).
    # Contract dim 1 of both operands: [128, F] x [TB, F] -> [128, TB], i.e. the
    # batch-on-lanes layout used by all following layers.
    h = lax.dot_general(w1_ref[...], x,
                        dimension_numbers=(((1,), (1,)), ((), ())),
                        preferred_element_type=jnp.float32) + b1_ref[...]
    h = _leaky_relu(h)  # [128, TB]
    # TODO(synk): training-mode Dropout would need pltpu.prng_random_bits masking.

    # Layer 2: BN-folded Linear(128,64) + LeakyReLU (Dropout(0.2) == identity at eval)
    h = jnp.dot(w2_ref[...], h, preferred_element_type=jnp.float32) + b2_ref[...]
    h = _leaky_relu(h)  # [64, TB]

    # Layer 3: BN-folded Linear(64,32) + LeakyReLU
    h = jnp.dot(w3_ref[...], h, preferred_element_type=jnp.float32) + b3_ref[...]
    h = _leaky_relu(h)  # [32, TB]

    # Layer 4: Linear(32,1) + Sigmoid — VPU multiply + sublane (XLU) reduce;
    # an M=1 MXU pass would waste the array.
    logits = jnp.sum(h * w4_ref[...], axis=0, keepdims=True) + b4_ref[...]  # [1, TB]
    # Exact sigmoid kept (approx reciprocal would loosen the 2e-5 f32 tolerance;
    # this only touches the [1, TB] logits so it is already cheap).
    o_ref[...] = (1.0 / (1.0 + jnp.exp(-logits))).astype(o_ref.dtype)


def _fold_bn(w, b, gamma, beta, mean, var):
    # y = gamma * (x@W + b - mean) / sqrt(var+eps) + beta == x@(W*s) + ((b-mean)*s + beta)
    scale = gamma * lax.rsqrt(var + BN_EPS)          # (1, out)
    return w * scale, (b - mean) * scale + beta


def _round_up(x, m):
    return (x + m - 1) // m * m


def prepare_params(params):
    """One-time BN folding + transpose to the kernel's [out, in] layout.

    Hoisted out of the per-call path so inference calls don't redo the
    rsqrt/mul/transpose ops or rewrite folded weights to HBM every call.
    """
    (w1, b1, g1, be1, m1, v1,
     w2, b2, g2, be2, m2, v2,
     w3, b3, g3, be3, m3, v3,
     w4, b4) = params
    w1f, b1f = _fold_bn(w1, b1, g1, be1, m1, v1)
    w2f, b2f = _fold_bn(w2, b2, g2, be2, m2, v2)
    w3f, b3f = _fold_bn(w3, b3, g3, be3, m3, v3)
    return (w1f.T, b1f.T,        # [128, F],  [128, 1]
            w2f.T, b2f.T,        # [64, 128], [64, 1]
            w3f.T, b3f.T,        # [32, 64],  [32, 1]
            w4, b4)              # [32, 1],   [1, 1]


def _pick_tb(b_pad, f):
    """Batch tile size (multiple of 128 lanes).

    Aim for >=2 grid steps once B allows it (v7x: 2 TCs sharded via
    dimension_semantics=("parallel",)) while growing tiles up to 1024 lanes to
    amortize the ~0.35us per-grid-step overhead on single-TC v5e/v6e.
    """
    tb = min(1024, max(128, _round_up(pl.cdiv(b_pad, 2), 128)))
    # VMEM guard (v7x: 64 MiB physical / 32 MiB default scoped).  Resident
    # weights are double-buffered by Pallas even with constant index maps;
    # per-step cost is the double-buffered x tile plus the [H, TB] activations.
    weight_bytes = 2 * 4 * (128 * f + 64 * 128 + 32 * 64 + 32 + 128 + 64 + 32 + 2)
    per_lane_bytes = 4 * (2 * f + 128 + 128 + 64 + 32 + 2)
    budget = 24 * 1024 * 1024
    while tb > 128 and weight_bytes + tb * per_lane_bytes > budget:
        tb -= 128
    return tb


@jax.jit
def malware_detector_forward(x, folded_params):
    (w1t, b1c, w2t, b2c, w3t, b3c, w4c, b4c) = folded_params

    B, F = x.shape
    x = x.astype(jnp.float32)

    # Pad batch only to the 128-lane granule (not up to TB): the last grid
    # block may be partial — Pallas masks its out-of-range stores and batch
    # columns never mix, so garbage lanes stay confined and are sliced off.
    B_pad = _round_up(B, 128)
    x_pad = jnp.pad(x, ((0, B_pad - B), (0, 0)))        # row-major [B_pad, F]

    TB = _pick_tb(B_pad, F)

    const = lambda i: (0, 0)
    out_padded = pl.pallas_call(
        mlp_kernel,
        out_shape=jax.ShapeDtypeStruct((1, B_pad), jnp.float32),
        grid=(pl.cdiv(B_pad, TB),),
        in_specs=[
            pl.BlockSpec((TB, F), lambda i: (i, 0)),
            pl.BlockSpec(w1t.shape, const), pl.BlockSpec(b1c.shape, const),
            pl.BlockSpec(w2t.shape, const), pl.BlockSpec(b2c.shape, const),
            pl.BlockSpec(w3t.shape, const), pl.BlockSpec(b3c.shape, const),
            pl.BlockSpec(w4c.shape, const), pl.BlockSpec(b4c.shape, const),
        ],
        out_specs=pl.BlockSpec((1, TB), lambda i: (0, i)),
        compiler_params=pltpu.CompilerParams(
            dimension_semantics=("parallel",)),
    )(x_pad, w1t, b1c, w2t, b2c, w3t, b3c, w4c, b4c)

    return out_padded[0, :B].reshape(B, 1)


def init_params(input_size, key):
    """Deterministic PyTorch-default-style init (uniform +/- 1/sqrt(fan_in))."""
    dims = [(input_size, 128), (128, 64), (64, 32), (32, 1)]
    params = []
    for i, (fan_in, fan_out) in enumerate(dims):
        key, kw, kb, kg, kbe, km, kv = jax.random.split(key, 7)
        bound = 1.0 / jnp.sqrt(float(fan_in))
        w = jax.random.uniform(kw, (fan_in, fan_out), jnp.float32, -bound, bound)
        b = jax.random.uniform(kb, (1, fan_out), jnp.float32, -bound, bound)
        layer = [w, b]
        if i < 3:  # first three layers have BatchNorm1d
            gamma = jax.random.uniform(kg, (1, fan_out), jnp.float32, 0.8, 1.2)
            beta = jax.random.uniform(kbe, (1, fan_out), jnp.float32, -0.1, 0.1)
            rmean = jax.random.uniform(km, (1, fan_out), jnp.float32, -0.2, 0.2)
            rvar = jax.random.uniform(kv, (1, fan_out), jnp.float32, 0.5, 1.5)
            layer += [gamma, beta, rmean, rvar]
        params += layer
    return tuple(params)


def _bn(h, gamma, beta, mean, var):
    return (h - mean) * (gamma * lax.rsqrt(var + BN_EPS)) + beta


def reference_forward(x, params):
    (w1, b1, g1, be1, m1, v1,
     w2, b2, g2, be2, m2, v2,
     w3, b3, g3, be3, m3, v3,
     w4, b4) = params
    h = x @ w1 + b1
    h = _leaky_relu(_bn(h, g1, be1, m1, v1))
    h = h @ w2 + b2
    h = _leaky_relu(_bn(h, g2, be2, m2, v2))
    h = h @ w3 + b3
    h = _leaky_relu(_bn(h, g3, be3, m3, v3))
    return jax.nn.sigmoid(h @ w4 + b4)


if __name__ == "__main__":
    key = jax.random.PRNGKey(0)
    kx, kp = jax.random.split(key)

    batch, input_size = 8, 32
    x = jax.random.normal(kx, (batch, input_size), dtype=jnp.float32)
    params = init_params(input_size, kp)

    folded = prepare_params(params)          # one-time, outside the hot path
    out = malware_detector_forward(x, folded)
    out = jax.block_until_ready(out)

    ref = reference_forward(x, params)
    assert out.shape == (batch, 1), out.shape
    assert jnp.allclose(out, ref, atol=2e-5, rtol=2e-5), (out, ref)
    print("KERNEL_OK")
</pallas_src>

<mosaic_0001>
module attributes {stable_mosaic.version = 11 : i64} {
  func.func @mlp_kernel(%arg0: i32, %arg1: memref<128x32xf32, #tpu.memory_space<vmem>>, %arg2: memref<128x32xf32, #tpu.memory_space<vmem>>, %arg3: memref<128x1xf32, #tpu.memory_space<vmem>>, %arg4: memref<64x128xf32, #tpu.memory_space<vmem>>, %arg5: memref<64x1xf32, #tpu.memory_space<vmem>>, %arg6: memref<32x64xf32, #tpu.memory_space<vmem>>, %arg7: memref<32x1xf32, #tpu.memory_space<vmem>>, %arg8: memref<32x1xf32, #tpu.memory_space<vmem>>, %arg9: memref<1x1xf32, #tpu.memory_space<vmem>>, %arg10: memref<1x128xf32, #tpu.memory_space<vmem>>) attributes {dimension_semantics = [#tpu.dimension_semantics<parallel>], iteration_bounds = array<i64: 1>, scalar_prefetch = 0 : i64, scratch_operands = 0 : i64, tpu.core_type = #tpu.core_type<tc>, window_params = [{transform_indices = @transform_0, window_bounds = array<i64: 128, 32>}, {pipeline_mode = #tpu.pipeline_mode<synchronous>, transform_indices = @transform_1, window_bounds = array<i64: 128, 32>}, {pipeline_mode = #tpu.pipeline_mode<synchronous>, transform_indices = @transform_2, window_bounds = array<i64: 128, 1>}, {pipeline_mode = #tpu.pipeline_mode<synchronous>, transform_indices = @transform_3, window_bounds = array<i64: 64, 128>}, {pipeline_mode = #tpu.pipeline_mode<synchronous>, transform_indices = @transform_4, window_bounds = array<i64: 64, 1>}, {pipeline_mode = #tpu.pipeline_mode<synchronous>, transform_indices = @transform_5, window_bounds = array<i64: 32, 64>}, {pipeline_mode = #tpu.pipeline_mode<synchronous>, transform_indices = @transform_6, window_bounds = array<i64: 32, 1>}, {pipeline_mode = #tpu.pipeline_mode<synchronous>, transform_indices = @transform_7, window_bounds = array<i64: 32, 1>}, {pipeline_mode = #tpu.pipeline_mode<synchronous>, transform_indices = @transform_8, window_bounds = array<i64: 1, 1>}, {transform_indices = @transform_9, window_bounds = array<i64: 1, 128>}]} {
    %c0 = arith.constant 0 : index
    %c0_0 = arith.constant 0 : index
    %0 = vector.load %arg1[%c0, %c0_0] : memref<128x32xf32, #tpu.memory_space<vmem>>, vector<128x32xf32>
    %c0_1 = arith.constant 0 : index
    %c0_2 = arith.constant 0 : index
    %1 = vector.load %arg2[%c0_1, %c0_2] : memref<128x32xf32, #tpu.memory_space<vmem>>, vector<128x32xf32>
    %cst = arith.constant dense<0.000000e+00> : vector<128x128xf32>
    %2 = tpu.matmul %1, %0, %cst {dimension_numbers = #tpu.dot_dimension_numbers<[1], [1], [0], [0], [0, 0, 1, 0], [], []>} : vector<128x32xf32>, vector<128x32xf32>, vector<128x128xf32> -> vector<128x128xf32>
    %c0_3 = arith.constant 0 : index
    %c0_4 = arith.constant 0 : index
    %3 = vector.load %arg3[%c0_3, %c0_4] : memref<128x1xf32, #tpu.memory_space<vmem>>, vector<128x1xf32>
    %4 = vector.broadcast %3 : vector<128x1xf32> to vector<128x128xf32>
    %5 = arith.addf %2, %4 : vector<128x128xf32>
    %cst_5 = arith.constant 0.000000e+00 : f32
    %6 = vector.broadcast %cst_5 : f32 to vector<128x128xf32>
    %7 = arith.cmpf ogt, %5, %6 : vector<128x128xf32>
    %cst_6 = arith.constant 1.000000e-01 : f32
    %8 = vector.broadcast %cst_6 : f32 to vector<128x128xf32>
    %9 = arith.mulf %8, %5 : vector<128x128xf32>
    %10 = arith.select %7, %5, %9 : vector<128x128xi1>, vector<128x128xf32>
    %c0_7 = arith.constant 0 : index
    %c0_8 = arith.constant 0 : index
    %11 = vector.load %arg4[%c0_7, %c0_8] : memref<64x128xf32, #tpu.memory_space<vmem>>, vector<64x128xf32>
    %cst_9 = arith.constant dense<0.000000e+00> : vector<64x128xf32>
    %12 = tpu.matmul %11, %10, %cst_9 {dimension_numbers = #tpu.dot_dimension_numbers<[1], [0], [0], [1], [0, 0, 1, 1], [], []>} : vector<64x128xf32>, vector<128x128xf32>, vector<64x128xf32> -> vector<64x128xf32>
    %c0_10 = arith.constant 0 : index
    %c0_11 = arith.constant 0 : index
    %13 = vector.load %arg5[%c0_10, %c0_11] : memref<64x1xf32, #tpu.memory_space<vmem>>, vector<64x1xf32>
    %14 = vector.broadcast %13 : vector<64x1xf32> to vector<64x128xf32>
    %15 = arith.addf %12, %14 : vector<64x128xf32>
    %cst_12 = arith.constant 0.000000e+00 : f32
    %16 = vector.broadcast %cst_12 : f32 to vector<64x128xf32>
    %17 = arith.cmpf ogt, %15, %16 : vector<64x128xf32>
    %cst_13 = arith.constant 1.000000e-01 : f32
    %18 = vector.broadcast %cst_13 : f32 to vector<64x128xf32>
    %19 = arith.mulf %18, %15 : vector<64x128xf32>
    %20 = arith.select %17, %15, %19 : vector<64x128xi1>, vector<64x128xf32>
    %c0_14 = arith.constant 0 : index
    %c0_15 = arith.constant 0 : index
    %21 = vector.load %arg6[%c0_14, %c0_15] : memref<32x64xf32, #tpu.memory_space<vmem>>, vector<32x64xf32>
    %cst_16 = arith.constant dense<0.000000e+00> : vector<32x128xf32>
    %22 = tpu.matmul %21, %20, %cst_16 {dimension_numbers = #tpu.dot_dimension_numbers<[1], [0], [0], [1], [0, 0, 1, 1], [], []>} : vector<32x64xf32>, vector<64x128xf32>, vector<32x128xf32> -> vector<32x128xf32>
    %c0_17 = arith.constant 0 : index
    %c0_18 = arith.constant 0 : index
    %23 = vector.load %arg7[%c0_17, %c0_18] : memref<32x1xf32, #tpu.memory_space<vmem>>, vector<32x1xf32>
    %24 = vector.broadcast %23 : vector<32x1xf32> to vector<32x128xf32>
    %25 = arith.addf %22, %24 : vector<32x128xf32>
    %cst_19 = arith.constant 0.000000e+00 : f32
    %26 = vector.broadcast %cst_19 : f32 to vector<32x128xf32>
    %27 = arith.cmpf ogt, %25, %26 : vector<32x128xf32>
    %cst_20 = arith.constant 1.000000e-01 : f32
    %28 = vector.broadcast %cst_20 : f32 to vector<32x128xf32>
    %29 = arith.mulf %28, %25 : vector<32x128xf32>
    %30 = arith.select %27, %25, %29 : vector<32x128xi1>, vector<32x128xf32>
    %c0_21 = arith.constant 0 : index
    %c0_22 = arith.constant 0 : index
    %31 = vector.load %arg8[%c0_21, %c0_22] : memref<32x1xf32, #tpu.memory_space<vmem>>, vector<32x1xf32>
    %32 = vector.broadcast %31 : vector<32x1xf32> to vector<32x128xf32>
    %33 = arith.mulf %30, %32 : vector<32x128xf32>
    %cst_23 = arith.constant dense<0.000000e+00> : vector<128xf32>
    %34 = vector.multi_reduction <add>, %33, %cst_23 [0] : vector<32x128xf32> to vector<128xf32>
    %35 = vector.shape_cast %34 : vector<128xf32> to vector<1x128xf32>
    %c0_24 = arith.constant 0 : index
    %c0_25 = arith.constant 0 : index
    %36 = vector.load %arg9[%c0_24, %c0_25] : memref<1x1xf32, #tpu.memory_space<vmem>>, vector<1x1xf32>
    %37 = vector.broadcast %36 : vector<1x1xf32> to vector<1x128xf32>
    %38 = arith.addf %35, %37 : vector<1x128xf32>
    %cst_26 = arith.constant 0.000000e+00 : f32
    %39 = vector.broadcast %cst_26 : f32 to vector<1x128xf32>
    %40 = arith.subf %39, %38 : vector<1x128xf32>
    %41 = math.exp %40 : vector<1x128xf32>
    %cst_27 = arith.constant 1.000000e+00 : f32
    %42 = vector.broadcast %cst_27 : f32 to vector<1x128xf32>
    %43 = arith.addf %42, %41 : vector<1x128xf32>
    %cst_28 = arith.constant 1.000000e+00 : f32
    %44 = vector.broadcast %cst_28 : f32 to vector<1x128xf32>
    %45 = arith.divf %44, %43 : vector<1x128xf32>
    %c0_29 = arith.constant 0 : index
    %c0_30 = arith.constant 0 : index
    %46 = vector.load %arg10[%c0_29, %c0_30] : memref<1x128xf32, #tpu.memory_space<vmem>>, vector<1x128xf32>
    tpu.vector_store %arg10[%c0_29, %c0_30], %45 {strides = array<i32>} : memref<1x128xf32, #tpu.memory_space<vmem>>, vector<1x128xf32>,
    return
  }
  func.func @transform_0(%arg0: i32) -> (i32, i32) {
    %c0_i32 = arith.constant 0 : i32
    %c0_i32_0 = arith.constant 0 : i32
    return %arg0, %c0_i32 : i32, i32
  }
  func.func @transform_1(%arg0: i32) -> (i32, i32) {
    %c0_i32 = arith.constant 0 : i32
    %c0_i32_0 = arith.constant 0 : i32
    %c0_i32_1 = arith.constant 0 : i32
    return %c0_i32, %c0_i32_0 : i32, i32
  }
  func.func @transform_2(%arg0: i32) -> (i32, i32) {
    %c0_i32 = arith.constant 0 : i32
    %c0_i32_0 = arith.constant 0 : i32
    %c0_i32_1 = arith.constant 0 : i32
    return %c0_i32, %c0_i32_0 : i32, i32
  }
  func.func @transform_3(%arg0: i32) -> (i32, i32) {
    %c0_i32 = arith.constant 0 : i32
    %c0_i32_0 = arith.constant 0 : i32
    %c0_i32_1 = arith.constant 0 : i32
    return %c0_i32, %c0_i32_0 : i32, i32
  }
  func.func @transform_4(%arg0: i32) -> (i32, i32) {
    %c0_i32 = arith.constant 0 : i32
    %c0_i32_0 = arith.constant 0 : i32
    %c0_i32_1 = arith.constant 0 : i32
    return %c0_i32, %c0_i32_0 : i32, i32
  }
  func.func @transform_5(%arg0: i32) -> (i32, i32) {
    %c0_i32 = arith.constant 0 : i32
    %c0_i32_0 = arith.constant 0 : i32
    %c0_i32_1 = arith.constant 0 : i32
    return %c0_i32, %c0_i32_0 : i32, i32
  }
  func.func @transform_6(%arg0: i32) -> (i32, i32) {
    %c0_i32 = arith.constant 0 : i32
    %c0_i32_0 = arith.constant 0 : i32
    %c0_i32_1 = arith.constant 0 : i32
    return %c0_i32, %c0_i32_0 : i32, i32
  }
  func.func @transform_7(%arg0: i32) -> (i32, i32) {
    %c0_i32 = arith.constant 0 : i32
    %c0_i32_0 = arith.constant 0 : i32
    %c0_i32_1 = arith.constant 0 : i32
    return %c0_i32, %c0_i32_0 : i32, i32
  }
  func.func @transform_8(%arg0: i32) -> (i32, i32) {
    %c0_i32 = arith.constant 0 : i32
    %c0_i32_0 = arith.constant 0 : i32
    %c0_i32_1 = arith.constant 0 : i32
    return %c0_i32, %c0_i32_0 : i32, i32
  }
  func.func @transform_9(%arg0: i32) -> (i32, i32) {
    %c0_i32 = arith.constant 0 : i32
    %c0_i32_0 = arith.constant 0 : i32
    return %c0_i32, %arg0 : i32, i32
  }
}

</mosaic_0001>

<bundles_post_ra>
// kernel: malware_detector_forward.1
= control target key start
LH: loop header
LB: loop body
LE: loop exit
PB: predicated region body
PF: predicated region fallthrough
CT: control target
= control target key end

     0   :  { %vm162_vm0 = vcmask 261120   ;;  %v1163_v3 = vmov 0   ;;  %s1506_s0 = inlined_call_operand.vmem [shape: f32[128,32], index: 0, kind: input, shape index: {}]   ;;  %s1507_s8 = inlined_call_operand.<no memory space> [shape: f32[1,1], index: 8, kind: input, shape index: {}]   ;;  %s1508_s1 = inlined_call_operand.vmem [shape: f32[128,32], index: 1, kind: input, shape index: {}]   ;;  %s1509_s2 = inlined_call_operand.vmem [shape: f32[128,1], index: 2, kind: input, shape index: {}]   ;;  %s1510_s4 = inlined_call_operand.vmem [shape: f32[64,1], index: 4, kind: input, shape index: {}]   ;;  %s1511_s6 = inlined_call_operand.vmem [shape: f32[32,1], index: 6, kind: input, shape index: {}]   ;;  %s1512_s7 = inlined_call_operand.vmem [shape: f32[32,1], index: 7, kind: input, shape index: {}]   ;;  %s1513_s3 = inlined_call_operand.vmem [shape: f32[64,128], index: 3, kind: input, shape index: {}]   ;;  %s1514_s5 = inlined_call_operand.vmem [shape: f32[32,64], index: 5, kind: input, shape index: {}]   ;;  %s1515_s9 = inlined_call_operand.vmem [shape: f32[1,128], index: 9, kind: output, shape index: {}]  }
   0x1   :  { %v34_v0 = vld [vmem:[%s1506_s0] sm:$0xff]  ;;  %v35_v1 = vld [vmem:[%s1506_s0 + $0x8] sm:$0xff]  ;;  %vm1222_vm1 = vmpackc.low %vm162_vm0, %vm162_vm0  ;;  %1157 = vset.pattern.permute.xlu0 %v1163_v3  ;;  %1158 = vset.pattern.permute.xlu1 %v1163_v3  ;;  %v14_v4 = vstv %s1507_s8 }
   0x2   :  { %v1060_v5 = vpack.c.bf16 %v35_v1, %v34_v0  ;;  %v36_v6 = vld [vmem:[%s1506_s0 + $0x10] sm:$0xff]  ;;  %v37_v7 = vld [vmem:[%s1506_s0 + $0x18] sm:$0xff]  ;;  %15 = vst [vmem:[#allocation2] sm:$0x1] %v14_v4  ;;  %v50_v9 = vld [vmem:[%s1508_s1] sm:$0xff] }
   0x3   :  { %v1066_v8 = vpack.c.bf16 %v37_v7, %v36_v6  ;;  %v38_v10 = vld [vmem:[%s1506_s0 + $0x20] sm:$0xff]  ;;  %v39_v11 = vld [vmem:[%s1506_s0 + $0x28] sm:$0xff]  ;;  %970 = vmatprep.mubr.msk.f32.mxu0 %vm162_vm0, %v50_v9  ;;  %v68_v15 = vld [vmem:[%s1509_s2 + $0x10] sm:$0xff] }
   0x4   :  { %1062 = vmatprep.subr.msk.bf16.mxu0 %vm1222_vm1, %v1060_v5  ;;  %v1072_v12 = vpack.c.bf16 %v39_v11, %v38_v10  ;;  %v66_v13 = vld [vmem:[%s1509_s2] sm:$0xff]  ;;  %v67_v14 = vld [vmem:[%s1509_s2 + $0x8] sm:$0xff]  ;;  %94 = vperm.xlu1 %1158, %v68_v15   ;;  %v69_v16 = vld [vmem:[%s1509_s2 + $0x18] sm:$0xff] }
   0x5   :  { %1065 = vmatpush3.bf16.xpose.msk.msra.mxu0 %vm1222_vm1, %v1060_v5  ;;  %84 = vperm.xlu0 %1157, %v66_v13   ;;  %v40_v17 = vld [vmem:[%s1506_s0 + $0x30] sm:$0xff]  ;;  %v41_v18 = vld [vmem:[%s1506_s0 + $0x38] sm:$0xff]  ;;  %v70_v19 = vld [vmem:[%s1509_s2 + $0x20] sm:$0xff] }
   0x6   :  { %1068 = vmatprep.subr.msk.bf16.mxu0 %vm1222_vm1, %v1066_v8  ;;  %v1078_v20 = vpack.c.bf16 %v41_v18, %v40_v17  ;;  %v71_v21 = vld [vmem:[%s1509_s2 + $0x28] sm:$0xff]  ;;  %v72_v22 = vld [vmem:[%s1509_s2 + $0x30] sm:$0xff]  ;;  %v73_v23 = vld [vmem:[%s1509_s2 + $0x38] sm:$0xff] }
   0x7   :  { %v42_v24 = vld [vmem:[%s1506_s0 + $0x40] sm:$0xff]  ;;  %v43_v25 = vld [vmem:[%s1506_s0 + $0x48] sm:$0xff]  ;;  %v76_v29 = vld [vmem:[%s1509_s2 + $0x50] sm:$0xff] }
   0x8   :  { %99 = vperm.xlu1 %1158, %v69_v16   ;;  %v74_v26 = vld [vmem:[%s1509_s2 + $0x40] sm:$0xff]  ;;  %v1084_v27 = vpack.c.bf16 %v43_v25, %v42_v24  ;;  %v75_v28 = vld [vmem:[%s1509_s2 + $0x48] sm:$0xff]  ;;  %v77_v30 = vld [vmem:[%s1509_s2 + $0x58] sm:$0xff] }
   0x9   :  { %89 = vperm.xlu0 %1157, %v67_v14   ;;  %v44_v31 = vld [vmem:[%s1506_s0 + $0x50] sm:$0xff]  ;;  %v45_v32 = vld [vmem:[%s1506_s0 + $0x58] sm:$0xff]  ;;  %v78_v33 = vld [vmem:[%s1509_s2 + $0x60] sm:$0xff] }
   0xa   :  { %v1090_v34 = vpack.c.bf16 %v45_v32, %v44_v31  ;;  %v79_v35 = vld [vmem:[%s1509_s2 + $0x68] sm:$0xff]  ;;  %v80_v36 = vld [vmem:[%s1509_s2 + $0x70] sm:$0xff]  ;;  %v81_v37 = vld [vmem:[%s1509_s2 + $0x78] sm:$0xff] }
   0xb   :  { %v46_v38 = vld [vmem:[%s1506_s0 + $0x60] sm:$0xff]  ;;  %v47_v39 = vld [vmem:[%s1506_s0 + $0x68] sm:$0xff]  ;;  %v462_v43 = vld [vmem:[%s1510_s4 + $0x10] sm:$0xff] }
   0xc   :  { %109 = vperm.xlu1 %1158, %v71_v21   ;;  %v460_v40 = vld [vmem:[%s1510_s4] sm:$0xff]  ;;  %v1096_v41 = vpack.c.bf16 %v47_v39, %v46_v38  ;;  %v461_v42 = vld [vmem:[%s1510_s4 + $0x8] sm:$0xff]  ;;  %v463_v44 = vld [vmem:[%s1510_s4 + $0x18] sm:$0xff] }
   0xd   :  { %1071 = vmatpush3.bf16.xpose.msk.msra.mxu0 %vm1222_vm1, %v1066_v8  ;;  %104 = vperm.xlu0 %1157, %v70_v19   ;;  %v48_v45 = vld [vmem:[%s1506_s0 + $0x70] sm:$0xff]  ;;  %v49_v46 = vld [vmem:[%s1506_s0 + $0x78] sm:$0xff]  ;;  %v464_v47 = vld [vmem:[%s1510_s4 + $0x20] sm:$0xff] }
   0xe   :  { %1074 = vmatprep.subr.msk.bf16.mxu0 %vm1222_vm1, %v1072_v12  ;;  %v1102_v48 = vpack.c.bf16 %v49_v46, %v48_v45  ;;  %v465_v49 = vld [vmem:[%s1510_s4 + $0x28] sm:$0xff]  ;;  %v466_v50 = vld [vmem:[%s1510_s4 + $0x30] sm:$0xff]  ;;  %v467_v51 = vld [vmem:[%s1510_s4 + $0x38] sm:$0xff] }
   0xf   :  { %v641_v52 = vld [vmem:[%s1511_s6] sm:$0xff]  ;;  %v642_v53 = vld [vmem:[%s1511_s6 + $0x8] sm:$0xff]  ;;  %v643_v54 = vld [vmem:[%s1511_s6 + $0x10] sm:$0xff] }
  0x10   :  { %119 = vperm.xlu1 %1158, %v73_v23   ;;  %v644_v55 = vld [vmem:[%s1511_s6 + $0x18] sm:$0xff]  ;;  %v775_v56 = vld [vmem:[%s1512_s7] sm:$0xff]  ;;  %v51_v57 = vld [vmem:[%s1508_s1 + $0x8] sm:$0xff] }
  0x11   :  { %114 = vperm.xlu0 %1157, %v72_v22   ;;  %v52_v58 = vld [vmem:[%s1508_s1 + $0x10] sm:$0xff]  ;;  %v776_v59 = vld [vmem:[%s1512_s7 + $0x8] sm:$0xff]  ;;  %v53_v61 = vld [vmem:[%s1508_s1 + $0x18] sm:$0xff] }
  0x12   :  { %v777_v60 = vld [vmem:[%s1512_s7 + $0x10] sm:$0xff]  ;;  %v54_v62 = vld [vmem:[%s1508_s1 + $0x20] sm:$0xff]  ;;  %v778_v63 = vld [vmem:[%s1512_s7 + $0x18] sm:$0xff] }
  0x13   :  { %v812_v0 = vld [vmem:[#allocation2] sm:$0x1]  ;;  %v55_v1 = vld [vmem:[%s1508_s1 + $0x28] sm:$0xff]  ;;  %v56_v2 = vld [vmem:[%s1508_s1 + $0x30] sm:$0xff] }
  0x14   :  { %129 = vperm.xlu1 %1158, %v75_v28   ;;  %v57_v3 = vld [vmem:[%s1508_s1 + $0x38] sm:$0xff]  ;;  %v58_v4 = vld [vmem:[%s1508_s1 + $0x40] sm:$0xff]  ;;  %v59_v5 = vld [vmem:[%s1508_s1 + $0x48] sm:$0xff] }
  0x15   :  { %1077 = vmatpush3.bf16.xpose.msk.msra.mxu0 %vm1222_vm1, %v1072_v12  ;;  %124 = vperm.xlu0 %1157, %v74_v26   ;;  %v60_v6 = vld [vmem:[%s1508_s1 + $0x50] sm:$0xff]  ;;  %v61_v7 = vld [vmem:[%s1508_s1 + $0x58] sm:$0xff]  ;;  %v62_v8 = vld [vmem:[%s1508_s1 + $0x60] sm:$0xff] }
  0x16   :  { %1080 = vmatprep.subr.msk.bf16.mxu0 %vm1222_vm1, %v1078_v20  ;;  %v63_v9 = vld [vmem:[%s1508_s1 + $0x68] sm:$0xff]  ;;  %v64_v10 = vld [vmem:[%s1508_s1 + $0x70] sm:$0xff]  ;;  %v65_v11 = vld [vmem:[%s1508_s1 + $0x78] sm:$0xff] }
  0x17   :  { %v452_v12 = vld [vmem:[%s1513_s3] sm:$0xff] }
  0x18   :  { %139 = vperm.xlu1 %1158, %v77_v30   ;;  %1026 = vmatprep.mubr.f32.mxu1 %v452_v12 }
  0x19   :  { %134 = vperm.xlu0 %1157, %v76_v29  }
  0x1c   :  { %149 = vperm.xlu1 %1158, %v79_v35  }
  0x1d   :  { %1083 = vmatpush3.bf16.xpose.msk.msra.mxu0 %vm1222_vm1, %v1078_v20  ;;  %144 = vperm.xlu0 %1157, %v78_v33  }
  0x1e   :  { %1086 = vmatprep.subr.msk.bf16.mxu0 %vm1222_vm1, %v1084_v27 }
  0x20   :  { %159 = vperm.xlu1 %1158, %v81_v37  }
  0x21   :  { %154 = vperm.xlu0 %1157, %v80_v36  }
  0x24   :  { %475 = vperm.xlu1 %1158, %v461_v42  }
  0x25   :  { %1089 = vmatpush3.bf16.xpose.msk.msra.mxu0 %vm1222_vm1, %v1084_v27  ;;  %470 = vperm.xlu0 %1157, %v460_v40  }
  0x26   :  { %1092 = vmatprep.subr.msk.bf16.mxu0 %vm1222_vm1, %v1090_v34 }
  0x28   :  { %485 = vperm.xlu1 %1158, %v463_v44  }
  0x29   :  { %480 = vperm.xlu0 %1157, %v462_v43  }
  0x2c   :  { %495 = vperm.xlu1 %1158, %v465_v49  }
  0x2d   :  { %1095 = vmatpush3.bf16.xpose.msk.msra.mxu0 %vm1222_vm1, %v1090_v34  ;;  %490 = vperm.xlu0 %1157, %v464_v47  }
  0x2e   :  { %1098 = vmatprep.subr.msk.bf16.mxu0 %vm1222_vm1, %v1096_v41 }
  0x30   :  { %505 = vperm.xlu1 %1158, %v467_v51  }
  0x31   :  { %500 = vperm.xlu0 %1157, %v466_v50  }
  0x34   :  { %652 = vperm.xlu1 %1158, %v642_v53  }
  0x35   :  { %1101 = vmatpush3.bf16.xpose.msk.msra.mxu0 %vm1222_vm1, %v1096_v41  ;;  %647 = vperm.xlu0 %1157, %v641_v52  }
  0x36   :  { %1104 = vmatprep.subr.msk.bf16.mxu0 %vm1222_vm1, %v1102_v48 }
  0x38   :  { %662 = vperm.xlu1 %1158, %v644_v55  }
  0x39   :  { %657 = vperm.xlu0 %1157, %v643_v54  }
  0x3c   :  { %786 = vperm.xlu1 %1158, %v776_v59  }
  0x3d   :  { %1107 = vmatpush3.bf16.xpose.msk.msra.mxu0 %vm1222_vm1, %v1102_v48  ;;  %781 = vperm.xlu0 %1157, %v775_v56  }
  0x40   :  { %796 = vperm.xlu1 %1158, %v778_v63  }
  0x41   :  { %791 = vperm.xlu0 %1157, %v777_v60  }
  0x44   :  { %971 = vmatmul.mubr.msk.f32.vlgmr.msra.gmra.mrb[0].mxu0 %vm162_vm0, %v51_v57 }
  0x45   :  { %973 = vmatprep.mubr.msk.f32.mxu0 %vm162_vm0, %v52_v58  ;;  %815 = vperm.xlu0 %1157, %v812_v0  }
  0x48   :  { %974 = vmatmul.mubr.msk.f32.gmra.mrb[2].mxu0 %vm162_vm0, %v53_v61 }
  0x49   :  { %976 = vmatprep.mubr.msk.f32.mxu0 %vm162_vm0, %v54_v62 }
  0x4c   :  { %977 = vmatmul.mubr.msk.f32.gmra.mrb[4].mxu0 %vm162_vm0, %v55_v1 }
  0x4d   :  { %979 = vmatprep.mubr.msk.f32.mxu0 %vm162_vm0, %v56_v2 }
  0x50   :  { %980 = vmatmul.mubr.msk.f32.gmra.mrb[6].mxu0 %vm162_vm0, %v57_v3 }
  0x51   :  { %982 = vmatprep.mubr.msk.f32.mxu0 %vm162_vm0, %v58_v4 }
  0x54   :  { %983 = vmatmul.mubr.msk.f32.gmra.mrb[8].mxu0 %vm162_vm0, %v59_v5 }
  0x55   :  { %985 = vmatprep.mubr.msk.f32.mxu0 %vm162_vm0, %v60_v6 }
  0x58   :  { %986 = vmatmul.mubr.msk.f32.gmra.mrb[10].mxu0 %vm162_vm0, %v61_v7 }
  0x59   :  { %988 = vmatprep.mubr.msk.f32.mxu0 %vm162_vm0, %v62_v8 }
  0x5c   :  { %989 = vmatmul.mubr.msk.f32.gmra.mrb[12].mxu0 %vm162_vm0, %v63_v9 }
  0x5d   :  { %991 = vmatprep.mubr.msk.f32.mxu0 %vm162_vm0, %v64_v10 }
  0x60   :  { %992 = vmatmul.mubr.msk.f32.gmra.mrb[14].mxu0 %vm162_vm0, %v65_v11 }
  0x83   :  { %v95_v13 = vpop.permute.xlu1 %94 }
  0x84   :  { %v85_v14 = vpop.permute.xlu0 %84 }
  0x87   :  { %v100_v15 = vpop.permute.xlu1 %99 }
  0x88   :  { %v90_v16 = vpop.permute.xlu0 %89 }
  0x8b   :  { %v110_v17 = vpop.permute.xlu1 %109 }
  0x8c   :  { %v105_v18 = vpop.permute.xlu0 %104 }
  0x8f   :  { %v120_v24 = vpop.permute.xlu1 %119 }
  0x90   :  { %v115_v27 = vpop.permute.xlu0 %114 }
  0x93   :  { %v130_v40 = vpop.permute.xlu1 %129 }
  0x94   :  { %v125_v43 = vpop.permute.xlu0 %124 }
  0x97   :  { %v140_v55 = vpop.permute.xlu1 %139 }
  0x98   :  { %v135_v58 = vpop.permute.xlu0 %134 }
  0x9b   :  { %v150_v7 = vpop.permute.xlu1 %149 }
  0x9c   :  { %v145_v10 = vpop.permute.xlu0 %144 }
 0x117   :  { %v972_v19 = vpop.f32.mrb[0].mxu0 }
 0x118   :  { %v331_v20 = vadd.f32 %v972_v19, %v90_v16  ;;  %v325_v21 = vpop.f32.mrb[1].mxu0 }
 0x119   :  { %v326_v22 = vadd.f32 %v325_v21, %v85_v14 }
 0x11a   :  { %v421_v23 = vmul.f32 0.1, %v331_v20  ;;  %vm405_vm2 = vcmp.gt.f32.partialorder %v331_v20, 0.0 }
 0x11b   :  { %v420_v25 = vmul.f32 0.1, %v326_v22  ;;  %v975_v26 = vpop.f32.mrb[2].mxu0  ;;  %vm404_vm3 = vcmp.gt.f32.partialorder %v326_v22, 0.0 }
 0x11c   :  { %v341_v28 = vadd.f32 %v975_v26, %v100_v15  ;;  %v335_v29 = vpop.f32.mrb[3].mxu0  ;;  %v437_v30 = vsel %vm405_vm2, %v331_v20, %v421_v23  ;;  %vm665_vm2 = vcmask 523264  }
 0x11d   :  { %v336_v31 = vadd.f32 %v335_v29, %v95_v13  ;;  %v436_v32 = vsel %vm404_vm3, %v326_v22, %v420_v25  ;;  %v160_v22 = vpop.permute.xlu1 %159  ;;  %v155_v25 = vpop.permute.xlu0 %154 }
 0x11e   :  { %vm407_vm4 = vcmp.gt.f32.partialorder %v341_v28, 0.0  ;;  %v423_v33 = vmul.f32 0.1, %v341_v28  ;;  %v1108_v34 = vpack.c.bf16 %v437_v30, %v436_v32 }
 0x11f   :  { %vm406_vm5 = vcmp.gt.f32.partialorder %v336_v31, 0.0  ;;  %v422_v35 = vmul.f32 0.1, %v336_v31  ;;  %v978_v36 = vpop.f32.mrb[4].mxu0 }
 0x120   :  { %v351_v37 = vadd.f32 %v978_v36, %v110_v17  ;;  %v345_v38 = vpop.f32.mrb[5].mxu0  ;;  %1109 = vmatprep.subr.bf16.mxu1 %v1108_v34  ;;  %v439_v39 = vsel %vm407_vm4, %v341_v28, %v423_v33 }
 0x121   :  { %v346_v41 = vadd.f32 %v345_v38, %v105_v18  ;;  %1111 = vmatpush3.bf16.msra.mxu1 %v1108_v34  ;;  %v438_v42 = vsel %vm406_vm5, %v336_v31, %v422_v35  ;;  %v454_v38 = vld [vmem:[%s1513_s3 + $0x10] sm:$0xff] }
 0x122   :  { %vm409_vm6 = vcmp.gt.f32.partialorder %v351_v37, 0.0  ;;  %v425_v44 = vmul.f32 0.1, %v351_v37  ;;  %v1112_v45 = vpack.c.bf16 %v439_v39, %v438_v42  ;;  %v455_v39 = vld [vmem:[%s1513_s3 + $0x18] sm:$0xff]  ;;  %v458_v42 = vld [vmem:[%s1513_s3 + $0x30] sm:$0xff] }
 0x123   :  { %vm408_vm7 = vcmp.gt.f32.partialorder %v346_v41, 0.0  ;;  %v424_v46 = vmul.f32 0.1, %v346_v41  ;;  %v981_v47 = vpop.f32.mrb[6].mxu0 }
 0x124   :  { %v361_v48 = vadd.f32 %v981_v47, %v120_v24  ;;  %v355_v49 = vpop.f32.mrb[7].mxu0  ;;  %1113 = vmatprep.subr.bf16.mxu1 %v1112_v45  ;;  %v441_v50 = vsel %vm409_vm6, %v351_v37, %v425_v44  ;;  %v453_v37 = vld [vmem:[%s1513_s3 + $0x8] sm:$0xff]  ;;  %v637_v44 = vld [vmem:[%s1514_s5] sm:$0xff] }
 0x125   :  { %v356_v51 = vadd.f32 %v355_v49, %v115_v27  ;;  %1115 = vmatpush3.bf16.msra.mxu1 %v1112_v45  ;;  %v440_v52 = vsel %vm408_vm7, %v346_v41, %v424_v46  ;;  %v457_v41 = vld [vmem:[%s1513_s3 + $0x28] sm:$0xff]  ;;  %v476_v45 = vpop.permute.xlu1 %475  ;;  %v471_v46 = vpop.permute.xlu0 %470 }
 0x126   :  { %vm411_vm8 = vcmp.gt.f32.partialorder %v361_v48, 0.0  ;;  %v427_v53 = vmul.f32 0.1, %v361_v48  ;;  %v1116_v54 = vpack.c.bf16 %v441_v50, %v440_v52 }
 0x127   :  { %vm410_vm9 = vcmp.gt.f32.partialorder %v356_v51, 0.0  ;;  %v426_v56 = vmul.f32 0.1, %v356_v51  ;;  %v984_v57 = vpop.f32.mrb[8].mxu0 }
 0x128   :  { %v371_v59 = vadd.f32 %v984_v57, %v130_v40  ;;  %v365_v60 = vpop.f32.mrb[9].mxu0  ;;  %1117 = vmatprep.subr.bf16.mxu1 %v1116_v54  ;;  %v443_v61 = vsel %vm411_vm8, %v361_v48, %v427_v53  ;;  %v456_v40 = vld [vmem:[%s1513_s3 + $0x20] sm:$0xff] }
 0x129   :  { %v366_v62 = vadd.f32 %v365_v60, %v125_v43  ;;  %1119 = vmatpush3.bf16.msra.mxu1 %v1116_v54  ;;  %v442_v63 = vsel %vm410_vm9, %v356_v51, %v426_v56  ;;  %v459_v43 = vld [vmem:[%s1513_s3 + $0x38] sm:$0xff]  ;;  %v486_v47 = vpop.permute.xlu1 %485  ;;  %v481_v49 = vpop.permute.xlu0 %480 }
 0x12a   :  { %vm413_vm10 = vcmp.gt.f32.partialorder %v371_v59, 0.0  ;;  %v429_v0 = vmul.f32 0.1, %v371_v59  ;;  %v1120_v1 = vpack.c.bf16 %v443_v61, %v442_v63 }
 0x12b   :  { %vm412_vm11 = vcmp.gt.f32.partialorder %v366_v62, 0.0  ;;  %v428_v2 = vmul.f32 0.1, %v366_v62  ;;  %v987_v3 = vpop.f32.mrb[10].mxu0 }
 0x12c   :  { %v381_v4 = vadd.f32 %v987_v3, %v140_v55  ;;  %v375_v5 = vpop.f32.mrb[11].mxu0  ;;  %1121 = vmatprep.subr.bf16.mxu1 %v1120_v1  ;;  %v445_v6 = vsel %vm413_vm10, %v371_v59, %v429_v0 }
 0x12d   :  { %v376_v8 = vadd.f32 %v375_v5, %v135_v58  ;;  %1123 = vmatpush3.bf16.msra.mxu1 %v1120_v1  ;;  %v444_v9 = vsel %vm412_vm11, %v366_v62, %v428_v2  ;;  %v496_v59 = vpop.permute.xlu1 %495  ;;  %v491_v62 = vpop.permute.xlu0 %490 }
 0x12e   :  { %vm415_vm12 = vcmp.gt.f32.partialorder %v381_v4, 0.0  ;;  %v431_v11 = vmul.f32 0.1, %v381_v4  ;;  %v1124_v12 = vpack.c.bf16 %v445_v6, %v444_v9 }
 0x12f   :  { %vm414_vm13 = vcmp.gt.f32.partialorder %v376_v8, 0.0  ;;  %v430_v13 = vmul.f32 0.1, %v376_v8  ;;  %v990_v14 = vpop.f32.mrb[12].mxu0 }
 0x130   :  { %v391_v15 = vadd.f32 %v990_v14, %v150_v7  ;;  %v385_v16 = vpop.f32.mrb[13].mxu0  ;;  %1125 = vmatprep.subr.bf16.mxu1 %v1124_v12  ;;  %v447_v17 = vsel %vm415_vm12, %v381_v4, %v431_v11 }
 0x131   :  { %v386_v18 = vadd.f32 %v385_v16, %v145_v10  ;;  %1127 = vmatpush3.bf16.msra.mxu1 %v1124_v12  ;;  %v446_v19 = vsel %vm414_vm13, %v376_v8, %v430_v13  ;;  %v506_v10 = vpop.permute.xlu1 %505  ;;  %v501_v13 = vpop.permute.xlu0 %500 }
 0x132   :  { %vm417_vm14 = vcmp.gt.f32.partialorder %v391_v15, 0.0  ;;  %v433_v20 = vmul.f32 0.1, %v391_v15  ;;  %v1128_v21 = vpack.c.bf16 %v447_v17, %v446_v19 }
 0x133   :  { %vm416_vm15 = vcmp.gt.f32.partialorder %v386_v18, 0.0  ;;  %v432_v23 = vmul.f32 0.1, %v386_v18  ;;  %v993_v24 = vpop.f32.mrb[14].mxu0 }
 0x134   :  { %v401_v26 = vadd.f32 %v993_v24, %v160_v22  ;;  %v395_v27 = vpop.f32.mrb[15].mxu0  ;;  %1129 = vmatprep.subr.bf16.mxu1 %v1128_v21  ;;  %v449_v28 = vsel %vm417_vm14, %v391_v15, %v433_v20 }
 0x135   :  { %v396_v29 = vadd.f32 %v395_v27, %v155_v25  ;;  %1131 = vmatpush3.bf16.msra.mxu1 %v1128_v21  ;;  %v448_v30 = vsel %vm416_vm15, %v386_v18, %v432_v23  ;;  %v638_v25 = vld [vmem:[%s1514_s5 + $0x8] sm:$0xff]  ;;  %v640_v27 = vld [vmem:[%s1514_s5 + $0x18] sm:$0xff] }
 0x136   :  { %vm419_vm0 = vcmp.gt.f32.partialorder %v401_v26, 0.0  ;;  %v435_v31 = vmul.f32 0.1, %v401_v26  ;;  %v1132_v32 = vpack.c.bf16 %v449_v28, %v448_v30  ;;  %v648_v28 = vpop.permute.xlu0 %647 }
 0x137   :  { %vm418_vm1 = vcmp.gt.f32.partialorder %v396_v29, 0.0  ;;  %v434_v33 = vmul.f32 0.1, %v396_v29 }
 0x138   :  { %1133 = vmatprep.subr.bf16.mxu1 %v1132_v32  ;;  %v451_v34 = vsel %vm419_vm0, %v401_v26, %v435_v31  ;;  %v639_v26 = vld [vmem:[%s1514_s5 + $0x10] sm:$0xff] }
 0x139   :  { %1135 = vmatpush3.bf16.msra.mxu1 %v1132_v32  ;;  %v450_v35 = vsel %vm418_vm1, %v396_v29, %v434_v33  ;;  %v653_v29 = vpop.permute.xlu1 %652 }
 0x13a   :  { %v1136_v36 = vpack.c.bf16 %v451_v34, %v450_v35  ;;  %v658_v30 = vpop.permute.xlu0 %657 }
 0x13c   :  { %1137 = vmatprep.subr.bf16.mxu1 %v1136_v36 }
 0x13d   :  { %1139 = vmatpush3.bf16.msra.mxu1 %v1136_v36  ;;  %v663_v31 = vpop.permute.xlu1 %662 }
 0x140   :  { %1027 = vmatmul.mubr.f32.vlgmr.msra.gmra.mrb[0].mxu1 %v453_v37  ;;  %v782_v37 = vpop.permute.xlu0 %781 }
 0x141   :  { %1029 = vmatprep.mubr.f32.mxu1 %v454_v38 }
 0x144   :  { %1030 = vmatmul.mubr.f32.gmra.mrb[2].mxu1 %v455_v39 }
 0x145   :  { %1032 = vmatprep.mubr.f32.mxu1 %v456_v40  ;;  %v787_v40 = vpop.permute.xlu1 %786 }
 0x148   :  { %1033 = vmatmul.mubr.f32.gmra.mrb[4].mxu1 %v457_v41 }
 0x149   :  { %1035 = vmatprep.mubr.f32.mxu1 %v458_v42 }
 0x14c   :  { %1036 = vmatmul.mubr.f32.gmra.mrb[6].mxu1 %v459_v43 }
 0x14d   :  { %1054 = vmatprep.mubr.msk.f32.mxu1 %vm665_vm2, %v637_v44 }
 0x213   :  { %v1028_v48 = vpop.f32.mrb[0].mxu1 }
 0x214   :  { %v580_v50 = vadd.f32 %v1028_v48, %v476_v45  ;;  %v574_v51 = vpop.f32.mrb[1].mxu1 }
 0x215   :  { %v575_v52 = vadd.f32 %v574_v51, %v471_v46  ;;  %v792_v51 = vpop.permute.xlu0 %791 }
 0x216   :  { %vm614_vm3 = vcmp.gt.f32.partialorder %v580_v50, 0.0  ;;  %v622_v53 = vmul.f32 0.1, %v580_v50 }
 0x217   :  { %vm613_vm4 = vcmp.gt.f32.partialorder %v575_v52, 0.0  ;;  %v621_v54 = vmul.f32 0.1, %v575_v52  ;;  %v1031_v55 = vpop.f32.mrb[2].mxu1 }
 0x218   :  { %v590_v56 = vadd.f32 %v1031_v55, %v486_v47  ;;  %v584_v57 = vpop.f32.mrb[3].mxu1  ;;  %v630_v58 = vsel %vm614_vm3, %v580_v50, %v622_v53  ;;  %v797_v55 = vpop.permute.xlu1 %796 }
 0x219   :  { %v585_v60 = vadd.f32 %v584_v57, %v481_v49  ;;  %v629_v61 = vsel %vm613_vm4, %v575_v52, %v621_v54 }
 0x21a   :  { %vm616_vm5 = vcmp.gt.f32.partialorder %v590_v56, 0.0  ;;  %v624_v63 = vmul.f32 0.1, %v590_v56  ;;  %v1140_v0 = vpack.c.bf16 %v630_v58, %v629_v61  ;;  %v818_v58 = vlaneseq }
 0x21b   :  { %vm615_vm6 = vcmp.gt.f32.partialorder %v585_v60, 0.0  ;;  %v623_v1 = vmul.f32 0.1, %v585_v60  ;;  %v1034_v2 = vpop.f32.mrb[4].mxu1 }
 0x21c   :  { %v600_v3 = vadd.f32 %v1034_v2, %v496_v59  ;;  %v594_v4 = vpop.f32.mrb[5].mxu1  ;;  %1141 = vmatprep.subr.bf16.mxu1 %v1140_v0  ;;  %v632_v5 = vsel %vm616_vm5, %v590_v56, %v624_v63  ;;  %v819_v61 = vshrl.u32 %v818_v58, 7  ;;  %v816_v2 = vpop.permute.xlu0 %815 }
 0x21d   :  { %v595_v6 = vadd.f32 %v594_v4, %v491_v62  ;;  %1143 = vmatpush3.bf16.msra.mxu1 %v1140_v0  ;;  %v631_v7 = vsel %vm615_vm6, %v585_v60, %v623_v1 }
 0x21e   :  { %vm618_vm7 = vcmp.gt.f32.partialorder %v600_v3, 0.0  ;;  %v626_v8 = vmul.f32 0.1, %v600_v3  ;;  %v1144_v9 = vpack.c.bf16 %v632_v5, %v631_v7  ;;  %v820_v0 = vsub.s32 0, %v819_v61 }
 0x21f   :  { %vm617_vm8 = vcmp.gt.f32.partialorder %v595_v6, 0.0  ;;  %v625_v11 = vmul.f32 0.1, %v595_v6  ;;  %v1037_v12 = vpop.f32.mrb[6].mxu1 }
 0x220   :  { %v610_v14 = vadd.f32 %v1037_v12, %v506_v10  ;;  %v604_v15 = vpop.f32.mrb[7].mxu1  ;;  %1145 = vmatprep.subr.bf16.mxu1 %v1144_v9  ;;  %v634_v16 = vsel %vm618_vm7, %v600_v3, %v626_v8  ;;  %v821_v4 = vrot.slane %v816_v2, %v820_v0 }
 0x221   :  { %v605_v17 = vadd.f32 %v604_v15, %v501_v13  ;;  %1147 = vmatpush3.bf16.msra.mxu1 %v1144_v9  ;;  %v633_v18 = vsel %vm617_vm8, %v595_v6, %v625_v11 }
 0x222   :  { %vm620_vm9 = vcmp.gt.f32.partialorder %v610_v14, 0.0  ;;  %v628_v19 = vmul.f32 0.1, %v610_v14  ;;  %v1148_v20 = vpack.c.bf16 %v634_v16, %v633_v18 }
 0x223   :  { %vm619_vm10 = vcmp.gt.f32.partialorder %v605_v17, 0.0  ;;  %v627_v21 = vmul.f32 0.1, %v605_v17 }
 0x224   :  { %1149 = vmatprep.subr.bf16.mxu1 %v1148_v20  ;;  %v636_v22 = vsel %vm620_vm9, %v610_v14, %v628_v19 }
 0x225   :  { %1151 = vmatpush3.bf16.msra.mxu1 %v1148_v20  ;;  %v635_v23 = vsel %vm619_vm10, %v605_v17, %v627_v21 }
 0x226   :  { %v1152_v24 = vpack.c.bf16 %v636_v22, %v635_v23 }
 0x228   :  { %1153 = vmatprep.subr.bf16.mxu1 %v1152_v24 }
 0x229   :  { %1155 = vmatpush3.bf16.msra.mxu1 %v1152_v24 }
 0x22c   :  { %1055 = vmatmul.mubr.msk.f32.vlgmr.msra.gmra.mrb[8].mxu1 %vm665_vm2, %v638_v25 }
 0x22d   :  { %1057 = vmatprep.mubr.msk.f32.mxu1 %vm665_vm2, %v639_v26 }
 0x230   :  { %1058 = vmatmul.mubr.msk.f32.gmra.mrb[10].mxu1 %vm665_vm2, %v640_v27 }
 0x2ff   :  { %v1056_v32 = vpop.f32.mrb[8].mxu1 }
 0x300   :  { %v750_v33 = vadd.f32 %v1056_v32, %v653_v29  ;;  %v744_v34 = vpop.f32.mrb[9].mxu1 }
 0x301   :  { %v745_v35 = vadd.f32 %v744_v34, %v648_v28 }
 0x302   :  { %vm764_vm11 = vcmp.gt.f32.partialorder %v750_v33, 0.0  ;;  %v768_v36 = vmul.f32 0.1, %v750_v33 }
 0x303   :  { %vm763_vm12 = vcmp.gt.f32.partialorder %v745_v35, 0.0  ;;  %v767_v38 = vmul.f32 0.1, %v745_v35  ;;  %v1059_v39 = vpop.f32.mrb[10].mxu1 }
 0x304   :  { %v772_v41 = vsel %vm764_vm11, %v750_v33, %v768_v36  ;;  %v760_v42 = vadd.f32 %v1059_v39, %v663_v31  ;;  %v754_v43 = vpop.f32.mrb[11].mxu1 }
 0x305   :  { %v800_v44 = vmul.f32 %v787_v40, %v772_v41  ;;  %v771_v45 = vsel %vm763_vm12, %v745_v35, %v767_v38  ;;  %v755_v46 = vadd.f32 %v754_v43, %v658_v30 }
 0x306   :  { %v799_v47 = vmul.f32 %v782_v37, %v771_v45  ;;  %vm766_vm13 = vcmp.gt.f32.partialorder %v760_v42, 0.0  ;;  %v770_v48 = vmul.f32 0.1, %v760_v42 }
 0x307   :  { %vm765_vm14 = vcmp.gt.f32.partialorder %v755_v46, 0.0  ;;  %v769_v49 = vmul.f32 0.1, %v755_v46 }
 0x308   :  { %v803_v50 = vadd.f32 %v800_v44, %v799_v47  ;;  %v774_v52 = vsel %vm766_vm13, %v760_v42, %v770_v48 }
 0x309   :  { %v773_v53 = vsel %vm765_vm14, %v755_v46, %v769_v49  ;;  %v802_v56 = vmul.f32 %v797_v55, %v774_v52 }
 0x30a   :  { %v801_v54 = vmul.f32 %v792_v51, %v773_v53 }
 0x30c   :  { %v804_v57 = vadd.f32 %v803_v50, %v801_v54 }
 0x30e   :  { %v805_v59 = vadd.f32 %v804_v57, %v802_v56 }
 0x310   :  { %v806_v60 = vrot.slane %v805_v59, 4 }
 0x312   :  { %v807_v62 = vadd.f32 %v806_v60, %v805_v59 }
 0x314   :  { %v808_v63 = vrot.slane %v807_v62, 2 }
 0x316   :  { %v809_v1 = vadd.f32 %v808_v63, %v807_v62 }
 0x318   :  { %v810_v3 = vrot.slane %v809_v1, 1 }
 0x31a   :  { %v811_v5 = vadd.f32 %v810_v3, %v809_v1 }
 0x31c   :  { %v822_v6 = vadd.f32 %v821_v4, %v811_v5 }
 0x31e   :  { %v823_v7 = vsub.f32 0.0, %v822_v6 }
 0x320   :  { %v824_v8 = vmul.f32 1.442695, %v823_v7 }
 0x322   :  { %1159 = vpow2.f32 %v824_v8 }
 0x32c   :  { %v1160_v9 = vpop.eup %1159 }
 0x32d   :  { %v826_v10 = vadd.f32 1.0, %v1160_v9 }
 0x32f   :  { %1161 = vrcp.f32 %v826_v10 }
 0x339   :  { %v1162_v11 = vpop.eup %1161 }
 0x33a   :  { %829 = vst [vmem:[%s1515_s9] sm:$0x1] %v1162_v11 }

</bundles_post_ra>
